<compile_context>
chip_gen: v7x
topology: tpu7x:2x2x1
jax: 0.10.0
libtpu: 0.0.40
codegen_flags: <defaults>
</compile_context>

<pallas_src>
import functools

import jax
import jax.numpy as jnp
from jax.experimental import pallas as pl
from jax.experimental.pallas import tpu as pltpu


def _vmem_limit_bytes():
    """Generation-aware scoped-VMEM limit with headroom for compiler scratch."""
    try:
        cap = pltpu.get_tpu_info().vmem_capacity_bytes
    except Exception:
        cap = 64 * 1024 * 1024  # conservative (v7x-sized) fallback
    limit = int(cap * 7 // 8)                    # ~12% headroom
    return max(32 * 1024 * 1024, min(limit, 112 * 1024 * 1024))


def encoder_block_kernel(xq_ref, xf_ref, wqkv_ref, bqkv_ref, wo_ref, bo_ref,
                         g1_ref, be1_ref, w1_ref, b1_ref, w2_ref, b2_ref,
                         g2_ref, be2_ref, o_ref, k_scr, v_scr, *, num_heads):
    f32 = jnp.float32
    bf16 = jnp.bfloat16

    D = xq_ref.shape[-1]
    H = num_heads
    dh = D // H
    scale = 1.0 / (dh ** 0.5)

    wqkv = wqkv_ref[...]                # (D, 3D) bf16
    bqkv = bqkv_ref[...]                # (1, 3D) f32

    # ---- K/V projection: computed ONCE per batch element (qi == 0), cached in
    #      persistent bf16 VMEM scratch and reused by every query tile. ----
    @pl.when(pl.program_id(1) == 0)
    def _():
        xf = xf_ref[0]                  # (S, D) bf16 (pre-cast on host)
        k = jnp.dot(xf, wqkv[:, D:2 * D],
                    preferred_element_type=f32) + bqkv[:, D:2 * D]      # (S, D)
        v = jnp.dot(xf, wqkv[:, 2 * D:],
                    preferred_element_type=f32) + bqkv[:, 2 * D:]       # (S, D)
        k_scr[...] = k.astype(bf16)
        v_scr[...] = v.astype(bf16)

    # ---- Q projection for this query tile (bf16 MXU, f32 accumulation) ----
    xq = xq_ref[0].astype(f32)          # (tq, D) query tile, f32 for residual/LN
    q = jnp.dot(xq.astype(bf16), wqkv[:, 0:D],
                preferred_element_type=f32) + bqkv[:, 0:D]              # (tq, D)

    k = k_scr[...]                      # (S, D) bf16
    v = v_scr[...]                      # (S, D) bf16

    # ---- multi-head attention (per-head loop; dh << MXU width so the output
    #      projection is done as one K=D matmul after concatenating heads) ----
    ctx_heads = []
    for h in range(H):                  # static unroll (small H at these sizes)
        sl = slice(h * dh, (h + 1) * dh)
        qh = q[:, sl].astype(bf16)      # (tq, dh)
        kh = k[:, sl]                   # (S, dh) bf16
        vh = v[:, sl]                   # (S, dh) bf16
        logits = jnp.einsum('qd,kd->qk', qh, kh,
                            preferred_element_type=f32) * scale         # (tq, S)
        logits = logits - jnp.max(logits, axis=-1, keepdims=True)
        p = jnp.exp(logits)             # f32 exp (v5e has no bf16 EUP)
        # NOTE: approx reciprocal => rows normalized to ~1e-3 rel. error.
        p = p * pl.reciprocal(jnp.sum(p, axis=-1, keepdims=True), approx=True)
        ctx_heads.append(jnp.dot(p.astype(bf16), vh,
                                 preferred_element_type=f32))           # (tq, dh)
    ctx = jnp.concatenate(ctx_heads, axis=-1)                           # (tq, D)

    attn = jnp.dot(ctx.astype(bf16), wo_ref[...],
                   preferred_element_type=f32) + bo_ref[...]            # (tq, D)

    # ---- residual + LayerNorm 1 (f32 elementwise) ----
    y = xq + attn
    mu = jnp.mean(y, axis=-1, keepdims=True)
    var = jnp.mean((y - mu) ** 2, axis=-1, keepdims=True)
    y = (y - mu) * jax.lax.rsqrt(var + 1e-5) * g1_ref[...] + be1_ref[...]

    # ---- feed-forward (Linear -> ReLU -> Linear), bf16 MXU / f32 accum ----
    h1 = jnp.dot(y.astype(bf16), w1_ref[...], preferred_element_type=f32) + b1_ref[...]
    h1 = jnp.maximum(h1, 0.0)
    ff = jnp.dot(h1.astype(bf16), w2_ref[...], preferred_element_type=f32) + b2_ref[...]

    # ---- residual + LayerNorm 2 ----
    z = y + ff
    mu2 = jnp.mean(z, axis=-1, keepdims=True)
    var2 = jnp.mean((z - mu2) ** 2, axis=-1, keepdims=True)
    z = (z - mu2) * jax.lax.rsqrt(var2 + 1e-5) * g2_ref[...] + be2_ref[...]

    o_ref[0] = z.astype(o_ref.dtype)


def encoder_block_pallas(x, params, *, num_heads, q_tile=None,
                         single_buffer_weights=None):
    B, S, D = x.shape
    F = params["w1"].shape[1]
    assert D % num_heads == 0

    bf16 = jnp.bfloat16
    wqkv = params["wqkv"].astype(bf16)
    wo = params["wo"].astype(bf16)
    w1 = params["w1"].astype(bf16)
    w2 = params["w2"].astype(bf16)
    x_kv = x.astype(bf16)               # bf16 K/V-path activations (half DMA/VMEM)

    # Single-buffer the weights once they are big enough to matter (their
    # index_map is constant across the grid, so double-buffering buys nothing).
    weight_bytes = 2 * (wqkv.size + wo.size + w1.size + w2.size)
    if single_buffer_weights is None:
        single_buffer_weights = weight_bytes >= (8 << 20)

    if q_tile is None:
        if S <= 512:
            q_tile = S
        elif S % 512 == 0:
            q_tile = 512                 # big M-dim amortizes per-step overhead
        else:
            q_tile = 256
    assert S % q_tile == 0, "sequence length must be divisible by the query tile"
    n_q = S // q_tile

    def const_spec(shape):
        # Block index is constant across the whole grid (weights / biases).
        idx = lambda b, qi: (0,) * len(shape)
        if single_buffer_weights:
            return pl.BlockSpec(shape, idx, pipeline_mode=pl.Buffered(1))
        return pl.BlockSpec(shape, idx)

    kernel = functools.partial(encoder_block_kernel, num_heads=num_heads)

    in_specs = [
        pl.BlockSpec((1, q_tile, D), lambda b, qi: (b, qi, 0)),   # x query tile (f32)
        pl.BlockSpec((1, S, D), lambda b, qi: (b, 0, 0)),         # x full seq (bf16, K/V)
        const_spec((D, 3 * D)), const_spec((1, 3 * D)),           # wqkv, bqkv
        const_spec((D, D)), const_spec((1, D)),                   # wo, bo
        const_spec((1, D)), const_spec((1, D)),                   # ln1 gamma, beta
        const_spec((D, F)), const_spec((1, F)),                   # w1, b1
        const_spec((F, D)), const_spec((1, D)),                   # w2, b2
        const_spec((1, D)), const_spec((1, D)),                   # ln2 gamma, beta
    ]

    return pl.pallas_call(
        kernel,
        out_shape=jax.ShapeDtypeStruct((B, S, D), x.dtype),
        grid=(B, n_q),
        in_specs=in_specs,
        out_specs=pl.BlockSpec((1, q_tile, D), lambda b, qi: (b, qi, 0)),
        scratch_shapes=[pltpu.VMEM((S, D), bf16),     # K cache (per batch elem)
                        pltpu.VMEM((S, D), bf16)],    # V cache (per batch elem)
        compiler_params=pltpu.CompilerParams(
            # qi must be "arbitrary": the K/V scratch written at qi==0 is reused
            # by later qi steps, so that axis cannot be split across cores.
            dimension_semantics=("parallel", "arbitrary"),
            vmem_limit_bytes=_vmem_limit_bytes()),
    )(x, x_kv, wqkv, params["bqkv"], wo, params["bo"],
      params["g1"], params["be1"], w1, params["b1"],
      w2, params["b2"], params["g2"], params["be2"])


def transformer_encoder_pallas(x, layer_params, *, num_heads):
    # TODO(synk): prefetch next layer's weights as a cross-call DMA future.
    for p in layer_params:
        x = encoder_block_pallas(x, p, num_heads=num_heads)
    return x


# -------------------- pure-JAX f32 reference (for correctness check) --------------------
def encoder_block_ref(x, p, num_heads):
    B, S, D = x.shape
    dh = D // num_heads
    qkv = x @ p["wqkv"] + p["bqkv"][0]
    q, k, v = qkv[..., :D], qkv[..., D:2 * D], qkv[..., 2 * D:]

    def split(t):
        return t.reshape(B, S, num_heads, dh).transpose(0, 2, 1, 3)

    qh, kh, vh = split(q), split(k), split(v)
    logits = jnp.einsum("bhqd,bhkd->bhqk", qh, kh) / (dh ** 0.5)
    probs = jax.nn.softmax(logits, axis=-1)
    attn = jnp.einsum("bhqk,bhkd->bhqd", probs, vh).transpose(0, 2, 1, 3).reshape(B, S, D)
    attn = attn @ p["wo"] + p["bo"][0]

    def ln(t, g, b):
        mu = jnp.mean(t, axis=-1, keepdims=True)
        var = jnp.mean((t - mu) ** 2, axis=-1, keepdims=True)
        return (t - mu) * jax.lax.rsqrt(var + 1e-5) * g[0] + b[0]

    y = ln(x + attn, p["g1"], p["be1"])
    ff = jnp.maximum(y @ p["w1"] + p["b1"][0], 0.0) @ p["w2"] + p["b2"][0]
    return ln(y + ff, p["g2"], p["be2"])


def init_layer_params(key, D, F):
    ks = jax.random.split(key, 4)
    return {
        "wqkv": jax.random.normal(ks[0], (D, 3 * D), jnp.float32) * (1.0 / D ** 0.5),
        "bqkv": jnp.zeros((1, 3 * D), jnp.float32),
        "wo": jax.random.normal(ks[1], (D, D), jnp.float32) * (1.0 / D ** 0.5),
        "bo": jnp.zeros((1, D), jnp.float32),
        "g1": jnp.ones((1, D), jnp.float32),
        "be1": jnp.zeros((1, D), jnp.float32),
        "w1": jax.random.normal(ks[2], (D, F), jnp.float32) * (1.0 / D ** 0.5),
        "b1": jnp.zeros((1, F), jnp.float32),
        "w2": jax.random.normal(ks[3], (F, D), jnp.float32) * (1.0 / F ** 0.5),
        "b2": jnp.zeros((1, D), jnp.float32),
        "g2": jnp.ones((1, D), jnp.float32),
        "be2": jnp.zeros((1, D), jnp.float32),
    }


if __name__ == "__main__":
    B, S, D = 2, 8, 32          # batch, seq, model dim (toy sizes)
    NUM_HEADS = 4
    FFN = 64
    NUM_LAYERS = 2

    root = jax.random.PRNGKey(0)
    kx, kp = jax.random.split(root)
    x = jax.random.normal(kx, (B, S, D), jnp.float32)

    layer_keys = jax.random.split(kp, NUM_LAYERS)
    layer_params = [init_layer_params(k, D, FFN) for k in layer_keys]

    out = transformer_encoder_pallas(x, layer_params, num_heads=NUM_HEADS)
    out = jax.block_until_ready(out)

    # Reference check (f32 reference; tolerance reflects bf16 MXU operands /
    # bf16 K-V cache with f32 accumulation in the kernel).
    ref = x
    for p in layer_params:
        ref = encoder_block_ref(ref, p, NUM_HEADS)
    assert out.shape == (B, S, D)
    assert jnp.allclose(out, ref, atol=5e-2, rtol=5e-2), "mismatch vs JAX reference"

    print("KERNEL_OK")
</pallas_src>

<mosaic_0001>
module attributes {stable_mosaic.version = 11 : i64} {
  func.func @encoder_block_kernel(%arg0: i32, %arg1: i32, %arg2: memref<1x8x32xf32, #tpu.memory_space<vmem>>, %arg3: memref<1x8x32xbf16, #tpu.memory_space<vmem>>, %arg4: memref<32x96xbf16, #tpu.memory_space<vmem>>, %arg5: memref<1x96xf32, #tpu.memory_space<vmem>>, %arg6: memref<32x32xbf16, #tpu.memory_space<vmem>>, %arg7: memref<1x32xf32, #tpu.memory_space<vmem>>, %arg8: memref<1x32xf32, #tpu.memory_space<vmem>>, %arg9: memref<1x32xf32, #tpu.memory_space<vmem>>, %arg10: memref<32x64xbf16, #tpu.memory_space<vmem>>, %arg11: memref<1x64xf32, #tpu.memory_space<vmem>>, %arg12: memref<64x32xbf16, #tpu.memory_space<vmem>>, %arg13: memref<1x32xf32, #tpu.memory_space<vmem>>, %arg14: memref<1x32xf32, #tpu.memory_space<vmem>>, %arg15: memref<1x32xf32, #tpu.memory_space<vmem>>, %arg16: memref<1x8x32xf32, #tpu.memory_space<vmem>>, %arg17: memref<8x32xbf16, #tpu.memory_space<vmem>>, %arg18: memref<8x32xbf16, #tpu.memory_space<vmem>>) attributes {dimension_semantics = [#tpu.dimension_semantics<parallel>, #tpu.dimension_semantics<arbitrary>], iteration_bounds = array<i64: 2, 1>, scalar_prefetch = 0 : i64, scratch_operands = 2 : i64, tpu.core_type = #tpu.core_type<tc>, window_params = [{transform_indices = @transform_0, window_bounds = array<i64: 1, 8, 32>}, {transform_indices = @transform_1, window_bounds = array<i64: 1, 8, 32>}, {pipeline_mode = #tpu.pipeline_mode<synchronous>, transform_indices = @transform_2, window_bounds = array<i64: 32, 96>}, {pipeline_mode = #tpu.pipeline_mode<synchronous>, transform_indices = @transform_3, window_bounds = array<i64: 1, 96>}, {pipeline_mode = #tpu.pipeline_mode<synchronous>, transform_indices = @transform_4, window_bounds = array<i64: 32, 32>}, {pipeline_mode = #tpu.pipeline_mode<synchronous>, transform_indices = @transform_5, window_bounds = array<i64: 1, 32>}, {pipeline_mode = #tpu.pipeline_mode<synchronous>, transform_indices = @transform_6, window_bounds = array<i64: 1, 32>}, {pipeline_mode = #tpu.pipeline_mode<synchronous>, transform_indices = @transform_7, window_bounds = array<i64: 1, 32>}, {pipeline_mode = #tpu.pipeline_mode<synchronous>, transform_indices = @transform_8, window_bounds = array<i64: 32, 64>}, {pipeline_mode = #tpu.pipeline_mode<synchronous>, transform_indices = @transform_9, window_bounds = array<i64: 1, 64>}, {pipeline_mode = #tpu.pipeline_mode<synchronous>, transform_indices = @transform_10, window_bounds = array<i64: 64, 32>}, {pipeline_mode = #tpu.pipeline_mode<synchronous>, transform_indices = @transform_11, window_bounds = array<i64: 1, 32>}, {pipeline_mode = #tpu.pipeline_mode<synchronous>, transform_indices = @transform_12, window_bounds = array<i64: 1, 32>}, {pipeline_mode = #tpu.pipeline_mode<synchronous>, transform_indices = @transform_13, window_bounds = array<i64: 1, 32>}, {transform_indices = @transform_14, window_bounds = array<i64: 1, 8, 32>}]} {
    %c0 = arith.constant 0 : index
    %c0_0 = arith.constant 0 : index
    %0 = vector.load %arg4[%c0, %c0_0] : memref<32x96xbf16, #tpu.memory_space<vmem>>, vector<32x96xbf16>
    %c0_1 = arith.constant 0 : index
    %c0_2 = arith.constant 0 : index
    %1 = vector.load %arg5[%c0_1, %c0_2] : memref<1x96xf32, #tpu.memory_space<vmem>>, vector<1x96xf32>
    %c0_i32 = arith.constant 0 : i32
    %2 = arith.cmpi eq, %arg1, %c0_i32 : i32
    %3 = arith.extui %2 : i1 to i32
    %c0_i32_3 = arith.constant 0 : i32
    %4 = arith.cmpi ne, %3, %c0_i32_3 : i32
    scf.if %4 {
      %c0_68 = arith.constant 0 : index
      %c0_69 = arith.constant 0 : index
      %c0_70 = arith.constant 0 : index
      %165 = vector.load %arg3[%c0_68, %c0_69, %c0_70] : memref<1x8x32xbf16, #tpu.memory_space<vmem>>, vector<1x8x32xbf16>
      %166 = vector.shape_cast %165 : vector<1x8x32xbf16> to vector<8x32xbf16>
      %167 = vector.extract_strided_slice %0 {offsets = [0, 32], sizes = [32, 32], strides = [1, 1]} : vector<32x96xbf16> to vector<32x32xbf16>
      %cst_71 = arith.constant dense<0.000000e+00> : vector<8x32xf32>
      %168 = tpu.matmul %166, %167, %cst_71 {dimension_numbers = #tpu.dot_dimension_numbers<[1], [0], [0], [1], [0, 0, 1, 1], [], []>} : vector<8x32xbf16>, vector<32x32xbf16>, vector<8x32xf32> -> vector<8x32xf32>
      %169 = vector.extract_strided_slice %1 {offsets = [0, 32], sizes = [1, 32], strides = [1, 1]} : vector<1x96xf32> to vector<1x32xf32>
      %170 = vector.broadcast %169 : vector<1x32xf32> to vector<8x32xf32>
      %171 = arith.addf %168, %170 : vector<8x32xf32>
      %172 = vector.extract_strided_slice %0 {offsets = [0, 64], sizes = [32, 32], strides = [1, 1]} : vector<32x96xbf16> to vector<32x32xbf16>
      %cst_72 = arith.constant dense<0.000000e+00> : vector<8x32xf32>
      %173 = tpu.matmul %166, %172, %cst_72 {dimension_numbers = #tpu.dot_dimension_numbers<[1], [0], [0], [1], [0, 0, 1, 1], [], []>} : vector<8x32xbf16>, vector<32x32xbf16>, vector<8x32xf32> -> vector<8x32xf32>
      %174 = vector.extract_strided_slice %1 {offsets = [0, 64], sizes = [1, 32], strides = [1, 1]} : vector<1x96xf32> to vector<1x32xf32>
      %175 = vector.broadcast %174 : vector<1x32xf32> to vector<8x32xf32>
      %176 = arith.addf %173, %175 : vector<8x32xf32>
      %177 = arith.truncf %171 : vector<8x32xf32> to vector<8x32xbf16>
      %c0_73 = arith.constant 0 : index
      %c0_74 = arith.constant 0 : index
      %178 = vector.load %arg17[%c0_73, %c0_74] : memref<8x32xbf16, #tpu.memory_space<vmem>>, vector<8x32xbf16>
      tpu.vector_store %arg17[%c0_73, %c0_74], %177 {strides = array<i32>} : memref<8x32xbf16, #tpu.memory_space<vmem>>, vector<8x32xbf16>,
      %179 = arith.truncf %176 : vector<8x32xf32> to vector<8x32xbf16>
      %c0_75 = arith.constant 0 : index
      %c0_76 = arith.constant 0 : index
      %180 = vector.load %arg18[%c0_75, %c0_76] : memref<8x32xbf16, #tpu.memory_space<vmem>>, vector<8x32xbf16>
      tpu.vector_store %arg18[%c0_75, %c0_76], %179 {strides = array<i32>} : memref<8x32xbf16, #tpu.memory_space<vmem>>, vector<8x32xbf16>,
    } else {
    }
    %c0_4 = arith.constant 0 : index
    %c0_5 = arith.constant 0 : index
    %c0_6 = arith.constant 0 : index
    %5 = vector.load %arg2[%c0_4, %c0_5, %c0_6] : memref<1x8x32xf32, #tpu.memory_space<vmem>>, vector<1x8x32xf32>
    %6 = vector.shape_cast %5 : vector<1x8x32xf32> to vector<8x32xf32>
    %7 = arith.truncf %6 : vector<8x32xf32> to vector<8x32xbf16>
    %8 = vector.extract_strided_slice %0 {offsets = [0, 0], sizes = [32, 32], strides = [1, 1]} : vector<32x96xbf16> to vector<32x32xbf16>
    %cst = arith.constant dense<0.000000e+00> : vector<8x32xf32>
    %9 = tpu.matmul %7, %8, %cst {dimension_numbers = #tpu.dot_dimension_numbers<[1], [0], [0], [1], [0, 0, 1, 1], [], []>} : vector<8x32xbf16>, vector<32x32xbf16>, vector<8x32xf32> -> vector<8x32xf32>
    %10 = vector.extract_strided_slice %1 {offsets = [0, 0], sizes = [1, 32], strides = [1, 1]} : vector<1x96xf32> to vector<1x32xf32>
    %11 = vector.broadcast %10 : vector<1x32xf32> to vector<8x32xf32>
    %12 = arith.addf %9, %11 : vector<8x32xf32>
    %c0_7 = arith.constant 0 : index
    %c0_8 = arith.constant 0 : index
    %13 = vector.load %arg17[%c0_7, %c0_8] : memref<8x32xbf16, #tpu.memory_space<vmem>>, vector<8x32xbf16>
    %c0_9 = arith.constant 0 : index
    %c0_10 = arith.constant 0 : index
    %14 = vector.load %arg18[%c0_9, %c0_10] : memref<8x32xbf16, #tpu.memory_space<vmem>>, vector<8x32xbf16>
    %15 = vector.extract_strided_slice %12 {offsets = [0, 0], sizes = [8, 8], strides = [1, 1]} : vector<8x32xf32> to vector<8x8xf32>
    %16 = arith.truncf %15 : vector<8x8xf32> to vector<8x8xbf16>
    %17 = vector.extract_strided_slice %13 {offsets = [0, 0], sizes = [8, 8], strides = [1, 1]} : vector<8x32xbf16> to vector<8x8xbf16>
    %18 = vector.extract_strided_slice %14 {offsets = [0, 0], sizes = [8, 8], strides = [1, 1]} : vector<8x32xbf16> to vector<8x8xbf16>
    "tpu.trace_start"() <{level = 10 : i32, message = "qd,kd->qk"}> : () -> ()
    %cst_11 = arith.constant dense<0.000000e+00> : vector<8x8xf32>
    %19 = tpu.matmul %16, %17, %cst_11 {dimension_numbers = #tpu.dot_dimension_numbers<[1], [1], [0], [0], [0, 0, 1, 0], [], []>} : vector<8x8xbf16>, vector<8x8xbf16>, vector<8x8xf32> -> vector<8x8xf32>
    "tpu.trace_stop"() : () -> ()
    %cst_12 = arith.constant 0.353553385 : f32
    %20 = vector.broadcast %cst_12 : f32 to vector<8x8xf32>
    %21 = arith.mulf %19, %20 : vector<8x8xf32>
    %cst_13 = arith.constant dense<0xFF800000> : vector<8xf32>
    %22 = vector.multi_reduction <maximumf>, %21, %cst_13 [1] : vector<8x8xf32> to vector<8xf32>
    %23 = vector.shape_cast %22 : vector<8xf32> to vector<8x1xf32>
    %24 = vector.broadcast %23 : vector<8x1xf32> to vector<8x8xf32>
    %25 = arith.subf %21, %24 : vector<8x8xf32>
    %26 = math.exp %25 : vector<8x8xf32>
    %cst_14 = arith.constant dense<0.000000e+00> : vector<8xf32>
    %27 = vector.multi_reduction <add>, %26, %cst_14 [1] : vector<8x8xf32> to vector<8xf32>
    %28 = vector.shape_cast %27 : vector<8xf32> to vector<8x1xf32>
    %29 = tpu.reciprocal %28 {approx = true} : vector<8x1xf32> -> vector<8x1xf32>
    %30 = vector.broadcast %29 : vector<8x1xf32> to vector<8x8xf32>
    %31 = arith.mulf %26, %30 : vector<8x8xf32>
    %32 = arith.truncf %31 : vector<8x8xf32> to vector<8x8xbf16>
    %cst_15 = arith.constant dense<0.000000e+00> : vector<8x8xf32>
    %33 = tpu.matmul %32, %18, %cst_15 {dimension_numbers = #tpu.dot_dimension_numbers<[1], [0], [0], [1], [0, 0, 1, 1], [], []>} : vector<8x8xbf16>, vector<8x8xbf16>, vector<8x8xf32> -> vector<8x8xf32>
    %34 = vector.extract_strided_slice %12 {offsets = [0, 8], sizes = [8, 8], strides = [1, 1]} : vector<8x32xf32> to vector<8x8xf32>
    %35 = arith.truncf %34 : vector<8x8xf32> to vector<8x8xbf16>
    %36 = vector.extract_strided_slice %13 {offsets = [0, 8], sizes = [8, 8], strides = [1, 1]} : vector<8x32xbf16> to vector<8x8xbf16>
    %37 = vector.extract_strided_slice %14 {offsets = [0, 8], sizes = [8, 8], strides = [1, 1]} : vector<8x32xbf16> to vector<8x8xbf16>
    "tpu.trace_start"() <{level = 10 : i32, message = "qd,kd->qk"}> : () -> ()
    %cst_16 = arith.constant dense<0.000000e+00> : vector<8x8xf32>
    %38 = tpu.matmul %35, %36, %cst_16 {dimension_numbers = #tpu.dot_dimension_numbers<[1], [1], [0], [0], [0, 0, 1, 0], [], []>} : vector<8x8xbf16>, vector<8x8xbf16>, vector<8x8xf32> -> vector<8x8xf32>
    "tpu.trace_stop"() : () -> ()
    %cst_17 = arith.constant 0.353553385 : f32
    %39 = vector.broadcast %cst_17 : f32 to vector<8x8xf32>
    %40 = arith.mulf %38, %39 : vector<8x8xf32>
    %cst_18 = arith.constant dense<0xFF800000> : vector<8xf32>
    %41 = vector.multi_reduction <maximumf>, %40, %cst_18 [1] : vector<8x8xf32> to vector<8xf32>
    %42 = vector.shape_cast %41 : vector<8xf32> to vector<8x1xf32>
    %43 = vector.broadcast %42 : vector<8x1xf32> to vector<8x8xf32>
    %44 = arith.subf %40, %43 : vector<8x8xf32>
    %45 = math.exp %44 : vector<8x8xf32>
    %cst_19 = arith.constant dense<0.000000e+00> : vector<8xf32>
    %46 = vector.multi_reduction <add>, %45, %cst_19 [1] : vector<8x8xf32> to vector<8xf32>
    %47 = vector.shape_cast %46 : vector<8xf32> to vector<8x1xf32>
    %48 = tpu.reciprocal %47 {approx = true} : vector<8x1xf32> -> vector<8x1xf32>
    %49 = vector.broadcast %48 : vector<8x1xf32> to vector<8x8xf32>
    %50 = arith.mulf %45, %49 : vector<8x8xf32>
    %51 = arith.truncf %50 : vector<8x8xf32> to vector<8x8xbf16>
    %cst_20 = arith.constant dense<0.000000e+00> : vector<8x8xf32>
    %52 = tpu.matmul %51, %37, %cst_20 {dimension_numbers = #tpu.dot_dimension_numbers<[1], [0], [0], [1], [0, 0, 1, 1], [], []>} : vector<8x8xbf16>, vector<8x8xbf16>, vector<8x8xf32> -> vector<8x8xf32>
    %53 = vector.extract_strided_slice %12 {offsets = [0, 16], sizes = [8, 8], strides = [1, 1]} : vector<8x32xf32> to vector<8x8xf32>
    %54 = arith.truncf %53 : vector<8x8xf32> to vector<8x8xbf16>
    %55 = vector.extract_strided_slice %13 {offsets = [0, 16], sizes = [8, 8], strides = [1, 1]} : vector<8x32xbf16> to vector<8x8xbf16>
    %56 = vector.extract_strided_slice %14 {offsets = [0, 16], sizes = [8, 8], strides = [1, 1]} : vector<8x32xbf16> to vector<8x8xbf16>
    "tpu.trace_start"() <{level = 10 : i32, message = "qd,kd->qk"}> : () -> ()
    %cst_21 = arith.constant dense<0.000000e+00> : vector<8x8xf32>
    %57 = tpu.matmul %54, %55, %cst_21 {dimension_numbers = #tpu.dot_dimension_numbers<[1], [1], [0], [0], [0, 0, 1, 0], [], []>} : vector<8x8xbf16>, vector<8x8xbf16>, vector<8x8xf32> -> vector<8x8xf32>
    "tpu.trace_stop"() : () -> ()
    %cst_22 = arith.constant 0.353553385 : f32
    %58 = vector.broadcast %cst_22 : f32 to vector<8x8xf32>
    %59 = arith.mulf %57, %58 : vector<8x8xf32>
    %cst_23 = arith.constant dense<0xFF800000> : vector<8xf32>
    %60 = vector.multi_reduction <maximumf>, %59, %cst_23 [1] : vector<8x8xf32> to vector<8xf32>
    %61 = vector.shape_cast %60 : vector<8xf32> to vector<8x1xf32>
    %62 = vector.broadcast %61 : vector<8x1xf32> to vector<8x8xf32>
    %63 = arith.subf %59, %62 : vector<8x8xf32>
    %64 = math.exp %63 : vector<8x8xf32>
    %cst_24 = arith.constant dense<0.000000e+00> : vector<8xf32>
    %65 = vector.multi_reduction <add>, %64, %cst_24 [1] : vector<8x8xf32> to vector<8xf32>
    %66 = vector.shape_cast %65 : vector<8xf32> to vector<8x1xf32>
    %67 = tpu.reciprocal %66 {approx = true} : vector<8x1xf32> -> vector<8x1xf32>
    %68 = vector.broadcast %67 : vector<8x1xf32> to vector<8x8xf32>
    %69 = arith.mulf %64, %68 : vector<8x8xf32>
    %70 = arith.truncf %69 : vector<8x8xf32> to vector<8x8xbf16>
    %cst_25 = arith.constant dense<0.000000e+00> : vector<8x8xf32>
    %71 = tpu.matmul %70, %56, %cst_25 {dimension_numbers = #tpu.dot_dimension_numbers<[1], [0], [0], [1], [0, 0, 1, 1], [], []>} : vector<8x8xbf16>, vector<8x8xbf16>, vector<8x8xf32> -> vector<8x8xf32>
    %72 = vector.extract_strided_slice %12 {offsets = [0, 24], sizes = [8, 8], strides = [1, 1]} : vector<8x32xf32> to vector<8x8xf32>
    %73 = arith.truncf %72 : vector<8x8xf32> to vector<8x8xbf16>
    %74 = vector.extract_strided_slice %13 {offsets = [0, 24], sizes = [8, 8], strides = [1, 1]} : vector<8x32xbf16> to vector<8x8xbf16>
    %75 = vector.extract_strided_slice %14 {offsets = [0, 24], sizes = [8, 8], strides = [1, 1]} : vector<8x32xbf16> to vector<8x8xbf16>
    "tpu.trace_start"() <{level = 10 : i32, message = "qd,kd->qk"}> : () -> ()
    %cst_26 = arith.constant dense<0.000000e+00> : vector<8x8xf32>
    %76 = tpu.matmul %73, %74, %cst_26 {dimension_numbers = #tpu.dot_dimension_numbers<[1], [1], [0], [0], [0, 0, 1, 0], [], []>} : vector<8x8xbf16>, vector<8x8xbf16>, vector<8x8xf32> -> vector<8x8xf32>
    "tpu.trace_stop"() : () -> ()
    %cst_27 = arith.constant 0.353553385 : f32
    %77 = vector.broadcast %cst_27 : f32 to vector<8x8xf32>
    %78 = arith.mulf %76, %77 : vector<8x8xf32>
    %cst_28 = arith.constant dense<0xFF800000> : vector<8xf32>
    %79 = vector.multi_reduction <maximumf>, %78, %cst_28 [1] : vector<8x8xf32> to vector<8xf32>
    %80 = vector.shape_cast %79 : vector<8xf32> to vector<8x1xf32>
    %81 = vector.broadcast %80 : vector<8x1xf32> to vector<8x8xf32>
    %82 = arith.subf %78, %81 : vector<8x8xf32>
    %83 = math.exp %82 : vector<8x8xf32>
    %cst_29 = arith.constant dense<0.000000e+00> : vector<8xf32>
    %84 = vector.multi_reduction <add>, %83, %cst_29 [1] : vector<8x8xf32> to vector<8xf32>
    %85 = vector.shape_cast %84 : vector<8xf32> to vector<8x1xf32>
    %86 = tpu.reciprocal %85 {approx = true} : vector<8x1xf32> -> vector<8x1xf32>
    %87 = vector.broadcast %86 : vector<8x1xf32> to vector<8x8xf32>
    %88 = arith.mulf %83, %87 : vector<8x8xf32>
    %89 = arith.truncf %88 : vector<8x8xf32> to vector<8x8xbf16>
    %cst_30 = arith.constant dense<0.000000e+00> : vector<8x8xf32>
    %90 = tpu.matmul %89, %75, %cst_30 {dimension_numbers = #tpu.dot_dimension_numbers<[1], [0], [0], [1], [0, 0, 1, 1], [], []>} : vector<8x8xbf16>, vector<8x8xbf16>, vector<8x8xf32> -> vector<8x8xf32>
    %91 = tpu.concatenate %33, %52, %71, %90 in 1 : vector<8x8xf32>, vector<8x8xf32>, vector<8x8xf32>, vector<8x8xf32> -> vector<8x32xf32>
    %92 = arith.truncf %91 : vector<8x32xf32> to vector<8x32xbf16>
    %c0_31 = arith.constant 0 : index
    %c0_32 = arith.constant 0 : index
    %93 = vector.load %arg6[%c0_31, %c0_32] : memref<32x32xbf16, #tpu.memory_space<vmem>>, vector<32x32xbf16>
    %cst_33 = arith.constant dense<0.000000e+00> : vector<8x32xf32>
    %94 = tpu.matmul %92, %93, %cst_33 {dimension_numbers = #tpu.dot_dimension_numbers<[1], [0], [0], [1], [0, 0, 1, 1], [], []>} : vector<8x32xbf16>, vector<32x32xbf16>, vector<8x32xf32> -> vector<8x32xf32>
    %c0_34 = arith.constant 0 : index
    %c0_35 = arith.constant 0 : index
    %95 = vector.load %arg7[%c0_34, %c0_35] : memref<1x32xf32, #tpu.memory_space<vmem>>, vector<1x32xf32>
    %96 = vector.broadcast %95 : vector<1x32xf32> to vector<8x32xf32>
    %97 = arith.addf %94, %96 : vector<8x32xf32>
    %98 = arith.addf %6, %97 : vector<8x32xf32>
    %cst_36 = arith.constant dense<0.000000e+00> : vector<8xf32>
    %99 = vector.multi_reduction <add>, %98, %cst_36 [1] : vector<8x32xf32> to vector<8xf32>
    %100 = vector.shape_cast %99 : vector<8xf32> to vector<8x1xf32>
    %cst_37 = arith.constant 3.200000e+01 : f32
    %101 = vector.broadcast %cst_37 : f32 to vector<8x1xf32>
    %102 = arith.divf %100, %101 : vector<8x1xf32>
    %103 = vector.broadcast %102 : vector<8x1xf32> to vector<8x32xf32>
    %104 = arith.subf %98, %103 : vector<8x32xf32>
    %105 = arith.mulf %104, %104 : vector<8x32xf32>
    %cst_38 = arith.constant dense<0.000000e+00> : vector<8xf32>
    %106 = vector.multi_reduction <add>, %105, %cst_38 [1] : vector<8x32xf32> to vector<8xf32>
    %107 = vector.shape_cast %106 : vector<8xf32> to vector<8x1xf32>
    %cst_39 = arith.constant 3.200000e+01 : f32
    %108 = vector.broadcast %cst_39 : f32 to vector<8x1xf32>
    %109 = arith.divf %107, %108 : vector<8x1xf32>
    %110 = vector.broadcast %102 : vector<8x1xf32> to vector<8x32xf32>
    %111 = arith.subf %98, %110 : vector<8x32xf32>
    %cst_40 = arith.constant 9.99999974E-6 : f32
    %112 = vector.broadcast %cst_40 : f32 to vector<8x1xf32>
    %113 = arith.addf %109, %112 : vector<8x1xf32>
    %114 = math.rsqrt %113 : vector<8x1xf32>
    %115 = vector.broadcast %114 : vector<8x1xf32> to vector<8x32xf32>
    %116 = arith.mulf %111, %115 : vector<8x32xf32>
    %c0_41 = arith.constant 0 : index
    %c0_42 = arith.constant 0 : index
    %117 = vector.load %arg8[%c0_41, %c0_42] : memref<1x32xf32, #tpu.memory_space<vmem>>, vector<1x32xf32>
    %118 = vector.broadcast %117 : vector<1x32xf32> to vector<8x32xf32>
    %119 = arith.mulf %116, %118 : vector<8x32xf32>
    %c0_43 = arith.constant 0 : index
    %c0_44 = arith.constant 0 : index
    %120 = vector.load %arg9[%c0_43, %c0_44] : memref<1x32xf32, #tpu.memory_space<vmem>>, vector<1x32xf32>
    %121 = vector.broadcast %120 : vector<1x32xf32> to vector<8x32xf32>
    %122 = arith.addf %119, %121 : vector<8x32xf32>
    %123 = arith.truncf %122 : vector<8x32xf32> to vector<8x32xbf16>
    %c0_45 = arith.constant 0 : index
    %c0_46 = arith.constant 0 : index
    %124 = vector.load %arg10[%c0_45, %c0_46] : memref<32x64xbf16, #tpu.memory_space<vmem>>, vector<32x64xbf16>
    %cst_47 = arith.constant dense<0.000000e+00> : vector<8x64xf32>
    %125 = tpu.matmul %123, %124, %cst_47 {dimension_numbers = #tpu.dot_dimension_numbers<[1], [0], [0], [1], [0, 0, 1, 1], [], []>} : vector<8x32xbf16>, vector<32x64xbf16>, vector<8x64xf32> -> vector<8x64xf32>
    %c0_48 = arith.constant 0 : index
    %c0_49 = arith.constant 0 : index
    %126 = vector.load %arg11[%c0_48, %c0_49] : memref<1x64xf32, #tpu.memory_space<vmem>>, vector<1x64xf32>
    %127 = vector.broadcast %126 : vector<1x64xf32> to vector<8x64xf32>
    %128 = arith.addf %125, %127 : vector<8x64xf32>
    %cst_50 = arith.constant 0.000000e+00 : f32
    %129 = vector.broadcast %cst_50 : f32 to vector<8x64xf32>
    %130 = arith.maximumf %128, %129 : vector<8x64xf32>
    %131 = arith.truncf %130 : vector<8x64xf32> to vector<8x64xbf16>
    %c0_51 = arith.constant 0 : index
    %c0_52 = arith.constant 0 : index
    %132 = vector.load %arg12[%c0_51, %c0_52] : memref<64x32xbf16, #tpu.memory_space<vmem>>, vector<64x32xbf16>
    %cst_53 = arith.constant dense<0.000000e+00> : vector<8x32xf32>
    %133 = tpu.matmul %131, %132, %cst_53 {dimension_numbers = #tpu.dot_dimension_numbers<[1], [0], [0], [1], [0, 0, 1, 1], [], []>} : vector<8x64xbf16>, vector<64x32xbf16>, vector<8x32xf32> -> vector<8x32xf32>
    %c0_54 = arith.constant 0 : index
    %c0_55 = arith.constant 0 : index
    %134 = vector.load %arg13[%c0_54, %c0_55] : memref<1x32xf32, #tpu.memory_space<vmem>>, vector<1x32xf32>
    %135 = vector.broadcast %134 : vector<1x32xf32> to vector<8x32xf32>
    %136 = arith.addf %133, %135 : vector<8x32xf32>
    %137 = arith.addf %122, %136 : vector<8x32xf32>
    %cst_56 = arith.constant dense<0.000000e+00> : vector<8xf32>
    %138 = vector.multi_reduction <add>, %137, %cst_56 [1] : vector<8x32xf32> to vector<8xf32>
    %139 = vector.shape_cast %138 : vector<8xf32> to vector<8x1xf32>
    %cst_57 = arith.constant 3.200000e+01 : f32
    %140 = vector.broadcast %cst_57 : f32 to vector<8x1xf32>
    %141 = arith.divf %139, %140 : vector<8x1xf32>
    %142 = vector.broadcast %141 : vector<8x1xf32> to vector<8x32xf32>
    %143 = arith.subf %137, %142 : vector<8x32xf32>
    %144 = arith.mulf %143, %143 : vector<8x32xf32>
    %cst_58 = arith.constant dense<0.000000e+00> : vector<8xf32>
    %145 = vector.multi_reduction <add>, %144, %cst_58 [1] : vector<8x32xf32> to vector<8xf32>
    %146 = vector.shape_cast %145 : vector<8xf32> to vector<8x1xf32>
    %cst_59 = arith.constant 3.200000e+01 : f32
    %147 = vector.broadcast %cst_59 : f32 to vector<8x1xf32>
    %148 = arith.divf %146, %147 : vector<8x1xf32>
    %149 = vector.broadcast %141 : vector<8x1xf32> to vector<8x32xf32>
    %150 = arith.subf %137, %149 : vector<8x32xf32>
    %cst_60 = arith.constant 9.99999974E-6 : f32
    %151 = vector.broadcast %cst_60 : f32 to vector<8x1xf32>
    %152 = arith.addf %148, %151 : vector<8x1xf32>
    %153 = math.rsqrt %152 : vector<8x1xf32>
    %154 = vector.broadcast %153 : vector<8x1xf32> to vector<8x32xf32>
    %155 = arith.mulf %150, %154 : vector<8x32xf32>
    %c0_61 = arith.constant 0 : index
    %c0_62 = arith.constant 0 : index
    %156 = vector.load %arg14[%c0_61, %c0_62] : memref<1x32xf32, #tpu.memory_space<vmem>>, vector<1x32xf32>
    %157 = vector.broadcast %156 : vector<1x32xf32> to vector<8x32xf32>
    %158 = arith.mulf %155, %157 : vector<8x32xf32>
    %c0_63 = arith.constant 0 : index
    %c0_64 = arith.constant 0 : index
    %159 = vector.load %arg15[%c0_63, %c0_64] : memref<1x32xf32, #tpu.memory_space<vmem>>, vector<1x32xf32>
    %160 = vector.broadcast %159 : vector<1x32xf32> to vector<8x32xf32>
    %161 = arith.addf %158, %160 : vector<8x32xf32>
    %c0_65 = arith.constant 0 : index
    %c0_66 = arith.constant 0 : index
    %c0_67 = arith.constant 0 : index
    %162 = vector.load %arg16[%c0_65, %c0_66, %c0_67] : memref<1x8x32xf32, #tpu.memory_space<vmem>>, vector<1x8x32xf32>
    %163 = vector.shape_cast %162 : vector<1x8x32xf32> to vector<8x32xf32>
    %164 = vector.shape_cast %161 : vector<8x32xf32> to vector<1x8x32xf32>
    tpu.vector_store %arg16[%c0_65, %c0_66, %c0_67], %164 {strides = array<i32>} : memref<1x8x32xf32, #tpu.memory_space<vmem>>, vector<1x8x32xf32>,
    return
  }
  func.func @transform_0(%arg0: i32, %arg1: i32) -> (i32, i32, i32) {
    %c0_i32 = arith.constant 0 : i32
    %c0_i32_0 = arith.constant 0 : i32
    return %arg0, %arg1, %c0_i32 : i32, i32, i32
  }
  func.func @transform_1(%arg0: i32, %arg1: i32) -> (i32, i32, i32) {
    %c0_i32 = arith.constant 0 : i32
    %c0_i32_0 = arith.constant 0 : i32
    %c0_i32_1 = arith.constant 0 : i32
    return %arg0, %c0_i32, %c0_i32_0 : i32, i32, i32
  }
  func.func @transform_2(%arg0: i32, %arg1: i32) -> (i32, i32) {
    %c0_i32 = arith.constant 0 : i32
    %c0_i32_0 = arith.constant 0 : i32
    %c0_i32_1 = arith.constant 0 : i32
    return %c0_i32, %c0_i32_0 : i32, i32
  }
  func.func @transform_3(%arg0: i32, %arg1: i32) -> (i32, i32) {
    %c0_i32 = arith.constant 0 : i32
    %c0_i32_0 = arith.constant 0 : i32
    %c0_i32_1 = arith.constant 0 : i32
    return %c0_i32, %c0_i32_0 : i32, i32
  }
  func.func @transform_4(%arg0: i32, %arg1: i32) -> (i32, i32) {
    %c0_i32 = arith.constant 0 : i32
    %c0_i32_0 = arith.constant 0 : i32
    %c0_i32_1 = arith.constant 0 : i32
    return %c0_i32, %c0_i32_0 : i32, i32
  }
  func.func @transform_5(%arg0: i32, %arg1: i32) -> (i32, i32) {
    %c0_i32 = arith.constant 0 : i32
    %c0_i32_0 = arith.constant 0 : i32
    %c0_i32_1 = arith.constant 0 : i32
    return %c0_i32, %c0_i32_0 : i32, i32
  }
  func.func @transform_6(%arg0: i32, %arg1: i32) -> (i32, i32) {
    %c0_i32 = arith.constant 0 : i32
    %c0_i32_0 = arith.constant 0 : i32
    %c0_i32_1 = arith.constant 0 : i32
    return %c0_i32, %c0_i32_0 : i32, i32
  }
  func.func @transform_7(%arg0: i32, %arg1: i32) -> (i32, i32) {
    %c0_i32 = arith.constant 0 : i32
    %c0_i32_0 = arith.constant 0 : i32
    %c0_i32_1 = arith.constant 0 : i32
    return %c0_i32, %c0_i32_0 : i32, i32
  }
  func.func @transform_8(%arg0: i32, %arg1: i32) -> (i32, i32) {
    %c0_i32 = arith.constant 0 : i32
    %c0_i32_0 = arith.constant 0 : i32
    %c0_i32_1 = arith.constant 0 : i32
    return %c0_i32, %c0_i32_0 : i32, i32
  }
  func.func @transform_9(%arg0: i32, %arg1: i32) -> (i32, i32) {
    %c0_i32 = arith.constant 0 : i32
    %c0_i32_0 = arith.constant 0 : i32
    %c0_i32_1 = arith.constant 0 : i32
    return %c0_i32, %c0_i32_0 : i32, i32
  }
  func.func @transform_10(%arg0: i32, %arg1: i32) -> (i32, i32) {
    %c0_i32 = arith.constant 0 : i32
    %c0_i32_0 = arith.constant 0 : i32
    %c0_i32_1 = arith.constant 0 : i32
    return %c0_i32, %c0_i32_0 : i32, i32
  }
  func.func @transform_11(%arg0: i32, %arg1: i32) -> (i32, i32) {
    %c0_i32 = arith.constant 0 : i32
    %c0_i32_0 = arith.constant 0 : i32
    %c0_i32_1 = arith.constant 0 : i32
    return %c0_i32, %c0_i32_0 : i32, i32
  }
  func.func @transform_12(%arg0: i32, %arg1: i32) -> (i32, i32) {
    %c0_i32 = arith.constant 0 : i32
    %c0_i32_0 = arith.constant 0 : i32
    %c0_i32_1 = arith.constant 0 : i32
    return %c0_i32, %c0_i32_0 : i32, i32
  }
  func.func @transform_13(%arg0: i32, %arg1: i32) -> (i32, i32) {
    %c0_i32 = arith.constant 0 : i32
    %c0_i32_0 = arith.constant 0 : i32
    %c0_i32_1 = arith.constant 0 : i32
    return %c0_i32, %c0_i32_0 : i32, i32
  }
  func.func @transform_14(%arg0: i32, %arg1: i32) -> (i32, i32, i32) {
    %c0_i32 = arith.constant 0 : i32
    %c0_i32_0 = arith.constant 0 : i32
    return %arg0, %arg1, %c0_i32 : i32, i32, i32
  }
}

</mosaic_0001>

<bundles_post_ra>
// kernel: tpu_custom_call.1
= control target key start
LH: loop header
LB: loop body
LE: loop exit
PB: predicated region body
PF: predicated region fallthrough
CT: control target
= control target key end

     0   :  { %s2525_s0 = inlined_call_operand.vmem [shape: f32[2,8,32], index: 0, kind: input, shape index: {}]   ;;  %s2526_s1 = inlined_call_operand.hbm [shape: bf16[2,8,32], index: 1, kind: input, shape index: {}]   ;;  %s2527_s2 = inlined_call_operand.vmem [shape: bf16[32,96], index: 2, kind: input, shape index: {}]   ;;  %s2528_s3 = inlined_call_operand.vmem [shape: f32[1,96], index: 3, kind: input, shape index: {}]   ;;  %s2529_s4 = inlined_call_operand.vmem [shape: bf16[32,32], index: 4, kind: input, shape index: {}]   ;;  %s2530_s5 = inlined_call_operand.vmem [shape: f32[1,32], index: 5, kind: input, shape index: {}]   ;;  %s2531_s6 = inlined_call_operand.vmem [shape: f32[1,32], index: 6, kind: input, shape index: {}]   ;;  %s2532_s7 = inlined_call_operand.vmem [shape: f32[1,32], index: 7, kind: input, shape index: {}]   ;;  %s2533_s8 = inlined_call_operand.hbm [shape: bf16[32,64], index: 8, kind: input, shape index: {}]   ;;  %s2534_s9 = inlined_call_operand.vmem [shape: f32[1,64], index: 9, kind: input, shape index: {}]   ;;  %s2535_s10 = inlined_call_operand.vmem [shape: bf16[64,32], index: 10, kind: input, shape index: {}]   ;;  %s2536_s11 = inlined_call_operand.vmem [shape: f32[1,32], index: 11, kind: input, shape index: {}]   ;;  %s2537_s12 = inlined_call_operand.vmem [shape: f32[1,32], index: 12, kind: input, shape index: {}]   ;;  %s2538_s13 = inlined_call_operand.vmem [shape: f32[1,32], index: 13, kind: input, shape index: {}]   ;;  %s2539_s14 = inlined_call_operand.hbm [shape: f32[2,8,32], index: 14, kind: output, shape index: {}]  }
   0x1   :  { %2548 = sst [smem:[#allocation16_spill]] %s2525_s0 }
   0x2   :  { %2549 = sst [smem:[#allocation17_spill]] %s2533_s8 }
   0x3   :  { %2550 = sst [smem:[#allocation18_spill]] %s2534_s9 }
   0x4   :  { %2551 = sst [smem:[#allocation19_spill]] %s2536_s11 }
   0x5   :  { %2552 = sst [smem:[#allocation20_spill]] %s2537_s12 }
   0x6   :  { %2553 = sst [smem:[#allocation21_spill]] %s2538_s13 }
   0x7   :  { %2554 = sst [smem:[#allocation22_spill]] %s2539_s14 }
   0x8   :  { %19 = vsyncpa [#allocation5], 0 }
   0x9   :  { %21 = vsyncpa [#allocation5 + $0x1], 0 }
   0xa   :  { %22 = vsyncpa [#allocation8], 0 }
   0xb   :  { %23 = vsyncpa [#allocation6], 0 }
   0xc   :  { %25 = vsyncpa [#allocation6 + $0x1], 0  ;;  %s2145_s29 = smov 0   ;;  %s2147_s30 = smov 0  }
   0xd   :  { %s2149_s15 = smov 0   ;;  %s2151_s16 = smov 0  }
   0xe   :  { %s2153_s17 = smov 0   ;;  %s2155_s18 = smov 0  }
   0xf LB: > { %2555 = sst [smem:[#allocation13_spill]] %s2033_s29  ;;  %s1604_s19 = sadd.s32 4294967295, %s2053_s18   ;;  %s2053_s18 = sphi %s2155_s18, %s31_s18   ;;  %s2049_s17 = sphi %s2153_s17, %s2588_s17   ;;  %s2045_s16 = sphi %s2151_s16, %s2587_s16   ;;  %s2041_s15 = sphi %s2149_s15, %s2586_s15   ;;  %s2037_s30 = sphi %s2147_s30, %s2585_s30   ;;  %s2033_s29 = sphi %s2145_s29, %s2584_s29  }
  0x10   : > { %s1605_s20 = sadd.s32 4294967294, %s2053_s18   ;;  %p91_p0 = scmp.ne.s32.totalorder %s2037_s30, %s2033_s29 }
  0x11   : > { %p2179_p1 = scmp.eq.s32.totalorder %s1604_s19, 0  ;;  %p2183_p2 = scmp.eq.s32.totalorder %s1604_s19, 1 }
  0x12   : > { %p375_p3 = scmp.eq.s32.totalorder %s1605_s20, 1  ;;  %p1606_p5 = scmp.ge.s32.totalorder %s2053_s18, 1 }
  0x13   : > { %s2556_s21 = scalar_select %p2179_p1, 1, 0 }
  0x14   : > { %s2557_s22 = scalar_select %p2183_p2, 1, 0 }
  0x15   : > { %p2189_p4 = por %p2179_p1, %p91_p0  ;;  %p2194_p6 = por %p375_p3, %p91_p0 }
  0x16   : > { %p382_p7 = scmp.lt.s32.totalorder %s2053_s18, 3  ;;  %s2055_s26 = smov [#allocation7]  }
  0x17   : > { %s2558_s23 = scalar_select %p2189_p4, 1, 0 }
  0x18   : > { %s2559_s24 = scalar_select %p2194_p6, 1, 0 }
  0x19   : > { %p2199_p8 = pnand %p1606_p5, %p382_p7  ;;  %s412_s27 = sshll.u32 %s2055_s26, 4  ;;  %s413_s27 = int_to_ptr.vmem [resolvable:$true] %s412_s27 }
  0x1a   : > { %2560 = sst [smem:[#allocation14_spill]] %s2559_s24  ;;  %s43_s19 = sadd.s32 1, %s2049_s17 }
  0x1b   : > { %s2561_s25 = scalar_select %p2199_p8, 1, 0 }
  0x1c   : > { %p1800_p9 = pneg %p2199_p8  ;;  %s2563_s8 = sld [smem:[#allocation17_spill]] }
  0x1e   : > { %p2208_p11 = pnand %p1800_p9, %p2179_p1 }
  0x20   : > { %p1911_p13 = pneg %p2208_p11 }
  0x22   : > { %s1909_s29 = scalar_lea.hbm %s2563_s8, 256 }
  0x23   : > { %p1910_p12 = scmp.ne.s32.totalorder %s2563_s8, %s1909_s29  ;;  %p1916_p5 = scmp.lt.u32.totalorder %s1909_s29, %s2563_s8 }
  0x25   : > { %p1912_p0 = pnand %p1911_p13, %p1910_p12 }
  0x27   : > { %p1913_p3 = pneg %p1912_p0 }
  0x29   : > { %p1918_p7 = pnand %p1916_p5, %p1913_p3 }
  0x2b   : > { %1921 = shalt.err (!%p1918_p7)
}
  0x2c   : > { %s1922_s11 = scalar_lea.vmem %s413_s27, 256  ;;  %p1930_p1 = scmp.lt.s32.totalorder %s413_s27, %s413_s27 }
  0x2d   : > { %p1923_p9 = scmp.ne.s32.totalorder %s413_s27, %s1922_s11  ;;  %p1931_p4 = scmp.lt.s32.totalorder %s1922_s11, %s1922_s11 }
  0x2f   : > { %p1925_p10 = pnand %p1923_p9, %p1911_p13  ;;  %p1932_p8 = por %p1931_p4, %p1930_p1 }
  0x31   : > { %p1926_p6 = pneg %p1925_p10 }
  0x33   : > { %p1933_p2 = pnand %p1932_p8, %p1926_p6 }
  0x35   : > { %1936 = shalt.err (!%p1933_p2)
}
  0x36   : > { %s2056_s13 = smov 64   ;;  %s2057_s12 = smov 4  }
  0x37   : > { %1803 = dma.hbm_to_vmem [thread:$0]  (!%p2208_p11), %s2563_s8, 256, %s413_s27, [#allocation8], %s2056_s13, %s2056_s13, %s2057_s12  }
  0x38   : > { %p45_p1 = scmp.ge.s32.totalorder %s43_s19, 2  ;;  %s78_s11 = sadd.s32 1, %s2041_s15 }
  0x39   : > { %p85_p2 = scmp.ne.s32.totalorder %s2041_s15, %s2037_s30  ;;  %p86_p4 = scmp.eq.s32.totalorder %s2053_s18, 0 }
  0x3a   : > { %s2590_s19 = smov (%p45_p1, %s43_s19), 0  ;;  %p2566_p8 = scmp.ne.s32.totalorder %s2557_s22, 0 }
  0x3b   : > { %2564 = sst [smem:[#allocation15_spill]] %s2590_s19  ;;  %p2235_p6 = por %p86_p4, %p85_p2 }
  0x3c   : > { %p2241_p10 = por %p2566_p8, %p85_p2  ;;  %s75_s28 = ssub.s32 %s2049_s17, %s2590_s19 }
  0x3d   : > { %p1813_p12 = scmp.lt.s32.totalorder %s2053_s18, 2  ;;  %p76_p11 = scmp.eq.s32.totalorder %s75_s28, 0 }
  0x3e   : > { %s451_s27 = sand.u32 1, %s2041_s15   ;;  %s1610_s12 = sshll.u32 %s2049_s17, 6 }
  0x3f   : > { %s1609_s26 = sshll.u32 %s451_s27, 2  ;;  %s2256_s8 = scalar_lea.hbm %s2526_s1, %s1610_s12 }
  0x40   : > { %s2250_s13 = scalar_select %p76_p11, %s2041_s15, %s78_s11  }
  0x41   : > { %s455_s22 = scalar_lea.vmem [#allocation4], %s1609_s26  ;;  %p2262_p13 = pnand %p1813_p12, %p2235_p6 }
  0x42   : > { %s462_s9 = sshll.u32 %s455_s22, 4  ;;  %s452_s11 = scalar_lea.sflag [#allocation5], %s451_s27  ;;  %s2258_s9 = int_to_ptr.vmem [resolvable:$true] %s462_s9 }
  0x43   : > { %s1937_s19 = scalar_lea.hbm %s2256_s8, 64  ;;  %p1939_p3 = pneg %p2262_p13 }
  0x44   : > { %p1938_p0 = scmp.ne.s32.totalorder %s2256_s8, %s1937_s19  ;;  %s1942_s14 = scalar_lea.hbm %s2526_s1, 128 }
  0x45   : > { %p1943_p9 = scmp.lt.u32.totalorder %s2256_s8, %s2526_s1  ;;  %p1944_p1 = scmp.lt.u32.totalorder %s1942_s14, %s1937_s19 }
  0x46   : > { %p1940_p5 = pnand %p1939_p3, %p1938_p0  ;;  %p1946_p4 = scmp.lt.u32.totalorder %s1937_s19, %s2256_s8 }
  0x47   : > { %p1945_p2 = por %p1944_p1, %p1943_p9 }
  0x48   : > { %p1941_p7 = pneg %p1940_p5 }
  0x49   : > { %p1947_p6 = por %p1946_p4, %p1945_p2 }
  0x4b   : > { %p1948_p8 = pnand %p1947_p6, %p1941_p7 }
  0x4d   : > { %1951 = shalt.err (!%p1948_p8)
}
  0x4e   : > { %s1952_s27 = scalar_lea.vmem %s2258_s9, 64  ;;  %s2058_s22 = smov [#allocation4]  }
  0x4f   : > { %p1953_p12 = scmp.ne.s32.totalorder %s2258_s9, %s1952_s27  ;;  %s1957_s26 = sshll.u32 %s2058_s22, 4  ;;  %s1958_s26 = int_to_ptr.vmem [resolvable:$false] %s1957_s26 }
  0x50   : > { %s1959_s12 = scalar_lea.vmem %s1958_s26, 128  ;;  %p1960_p5 = scmp.lt.s32.totalorder %s2258_s9, %s1958_s26 }
  0x51   : > { %p1955_p11 = pnand %p1953_p12, %p1939_p3  ;;  %p1961_p9 = scmp.lt.s32.totalorder %s1959_s12, %s1952_s27 }
  0x53   : > { %p1956_p0 = pneg %p1955_p11  ;;  %p1962_p1 = por %p1961_p9, %p1960_p5 }
  0x55   : > { %p1963_p2 = pnand %p1962_p1, %p1956_p0 }
  0x57   : > { %1966 = shalt.err (!%p1963_p2)
}
  0x58   : > { %1807 = dma.hbm_to_vmem [thread:$0]  (!%p2262_p13), %s2256_s8, 64, %s2258_s9, %s452_s11  }
  0x59   : > { %p2569_p7 = scmp.ne.s32.totalorder %s2561_s25, 0 }
  0x5a   : > { %s2294_s19 = sand.u32 (!%p2569_p7), 1, %s2037_s30   ;;  %p2570_p3 = scmp.ne.s32.totalorder (!%p2569_p7), %s2558_s23, 0 }
  0x5b   : > { %471 = sbr.rel (%p2569_p7) target bundleno = 2753 (0xac1), region = 76  ;;  %s1612_s14 = sshll.u32 (!%p2569_p7), %s2294_s19, 2 }
  0x5c   : > { %s474_s24 = scalar_lea.sflag (!%p2569_p7), [#allocation5], %s2294_s19  ;;  %s477_s29 = scalar_lea.vmem (!%p2569_p7), [#allocation4], %s1612_s14 }
  0x62   : > { %2020 = dma.done.wait (%p2570_p3), %s474_s24, 64  }
  0x63   : > { %2022 = vsyncadd (%p2570_p3), %s474_s24, 4294967232  ;;  %p2571_p4 = scmp.ne.s32.totalorder %s2556_s21, 0 }
  0x65   : > { %2024 = dma.done.wait (%p2571_p4), [#allocation8], 256  }
  0x66   : > { %2026 = vsyncadd (%p2571_p4), [#allocation8], 4294967040  ;;  %v2059_v0 = vmov 0.0   ;;  %vm2060_vm0 = vmmov 0   ;;  %v1877_v1 = vld [vmem:[%s2527_s2] sm:$0xff]   ;;  %s2061_s21 = smov 96  }
  0x67   : > { %1692 = vmatprep.subr.bf16.mxu0 %v2059_v0  ;;  %1696 = vmatprep.mubr.msk.bf16.mxu0 %vm2060_vm0, %v2059_v0  ;;  %v1878_v2 = vld [vmem:[%s2527_s2 + $0x8] sm:$0xff]   ;;  %v2321_v3 = vld [vmem:[%s2528_s3] ss:$0 sm:$0xff]  ;;  %s2062_s27 = smov 64   ;;  %p533_p13 = scmp.lt.s32.totalorder %s2045_s16, 1  ;;  %vm575_vm1 = vcmask 261120  }
  0x68   : > { %1700 = vmatprep.subr.bf16.mxu1 %v2059_v0  ;;  %1704 = vmatprep.mubr.msk.bf16.mxu1 %vm2060_vm0, %v2059_v0  ;;  %v550_v7 = vld [vmem:[%s477_s29] sm:$0xf]  ;;  %s2572_s0 = sld [smem:[#allocation16_spill]]  ;;  %vm669_vm2 = vcmask 257024   ;;  %vm740_vm3 = vcmask 64512   ;;  %s2063_s29 = smov 120  }
  0x69   : > { %566 = vrot.lane.b32.xlu0 %v1877_v1, %s2061_s21  ;;  %572 = vrot.lane.b32.xlu1 %v2321_v3, %s2061_s21  ;;  %s534_s22 = scalar_select %p533_p13, %s2045_s16, 1  ;;  %vm803_vm4 = vcmask 1043456   ;;  %vm1200_vm5 = vcmask 130048   ;;  %vm1202_vm6 = vcmask 195584   ;;  %vm1410_vm7 = vcmask 523264  }
  0x6a   : > { %s2064_s8 = smov 112   ;;  %s2065_s9 = smov 104  }
  0x6b   : > { %s1615_s26 = sshll.u32 %s534_s22, 3  ;;  %s2066_s25 = smov 8  }
  0x6c   : > { %s2068_s22 = smov 24   ;;  %s2573_s14 = sld [smem:[#allocation18_spill]] }
  0x6d   : > { %568 = vrot.lane.b32.xlu0 %v1878_v2, %s2061_s21  ;;  %619 = vrot.lane.b32.xlu1 %v1877_v1, %s2062_s27  ;;  %s1486_s21 = scalar_lea.sflag [#allocation6], %s2294_s19 }
  0x6e   : > { %s539_s24 = scalar_lea.vmem %s2572_s0, %s1615_s26 }
  0x6f   : > { %v2336_v9 = vld [vmem:[%s539_s24] sm:$0xff] }
  0x70   : > { %v674_v10 = vpack.c.bf16 %v2336_v9, %v2336_v9 }
  0x71   : > { %621 = vrot.lane.b32.xlu0 %v1878_v2, %s2062_s27 }
  0xdb   : > { %v567_v4 = vpop.permute.xlu0 %566  ;;  %v573_v5 = vpop.permute.xlu1 %572 }
  0xdc   : > { %1693 = vmatpush3.bf16.msra.mxu0 %v567_v4 }
  0xdd   : > { %1694 = vmatprep.subr.bf16.mxu0 %v2059_v0 }
  0xdf   : > { %v569_v6 = vpop.permute.xlu0 %568  ;;  %v620_v8 = vpop.permute.xlu1 %619 }
  0xe0   : > { %1695 = vmatpush3.bf16.msra.mxu0 %v569_v6  ;;  %1701 = vmatpush3.bf16.msra.mxu1 %v620_v8 }
  0xe1   : > { %1708 = vmatprep.subr.bf16.mxu0 %v2059_v0  ;;  %1702 = vmatprep.subr.bf16.mxu1 %v2059_v0 }
  0xe3   : > { %1697 = vmatmul.mubr.msk.bf16.vlgmr.msra.gmra.mrb[0].mxu0 %vm575_vm1, %v550_v7  ;;  %v622_v11 = vpop.permute.xlu0 %621 }
  0xe4   : > { %1709 = vmatpush3.bf16.msra.mxu0 %v1877_v1  ;;  %1712 = vmatprep.mubr.msk.bf16.mxu0 %vm2060_vm0, %v2059_v0 }
  0xe5   : > { %1710 = vmatprep.subr.bf16.mxu0 %v2059_v0  ;;  %1703 = vmatpush3.bf16.msra.mxu1 %v622_v11 }
  0xe6   : > { %1716 = vmatprep.subr.bf16.mxu1 %v2059_v0 }
  0xe8   : > { %1711 = vmatpush3.bf16.msra.mxu0 %v1878_v2  ;;  %1705 = vmatmul.mubr.msk.bf16.vlgmr.msra.gmra.mrb[0].mxu1 %vm575_vm1, %v550_v7 }
  0xe9   : > { %1722 = vmatprep.subr.bf16.mxu0 %v2059_v0  ;;  %1718 = vmatprep.mubr.msk.bf16.mxu1 %vm2060_vm0, %v2059_v0 }
  0xeb   : > { %1713 = vmatmul.mubr.msk.bf16.vlgmr.msra.gmra.mrb[4].mxu0 %vm575_vm1, %v674_v10 }
  0xec   : > { %1724 = vmatprep.mubr.msk.bf16.mxu0 %vm2060_vm0, %v2059_v0 }
 0x1b6   : > { %v613_v12 = vpop.f32.mrb[0].mxu0 }
 0x1b7   : > { %v614_v13 = vadd.f32 %v613_v12, %v573_v5  ;;  %v1698_v14 = vpop.f32.mrb[1].mxu0 }
 0x1b8   : > { %v616_v15 = vpop.f32.mrb[2].mxu0 }
 0x1b9   : > { %v668_v16 = vpack.c.bf16 %v614_v13, %v614_v13  ;;  %v1699_v17 = vpop.f32.mrb[3].mxu0 }
 0x1bb   : > { %670 = vst.msk [vmem:[#allocation2] sm:$0xf] %vm669_vm2, %v668_v16  ;;  %v2363_v27 = vpop.f32.mrb[0].mxu1 }
 0x1bc   : > { %v1706_v28 = vpop.f32.mrb[1].mxu1 }
 0x1bd   : > { %v665_v29 = vpop.f32.mrb[2].mxu1 }
 0x1be   : > { %v731_v18 = vpop.f32.mrb[4].mxu0  ;;  %v1707_v30 = vpop.f32.mrb[3].mxu1 }
 0x1bf   : > { %v732_v19 = vadd.f32 %v2321_v3, %v731_v18  ;;  %v1714_v20 = vpop.f32.mrb[5].mxu0 }
 0x1c0   : > { %v734_v21 = vpop.f32.mrb[6].mxu0 }
 0x1c1   : > { %v739_v22 = vpack.c.bf16 %v732_v19, %v732_v19  ;;  %v1715_v23 = vpop.f32.mrb[7].mxu0 }
 0x1c2   : > { %v737_v24 = vld [vmem:[#allocation2] sm:$0xf] }
 0x1c3   : > { %v745_v25 = vsel %vm740_vm3, %v737_v24, 0  ;;  %v1625_v26 = vcombine.low %v737_v24, %v737_v24  ;;  %848 = vrot.lane.b32.xlu0 %v739_v22, %s2063_s29 }
 0x1c4   : > { %1717 = vmatpush3.bf16.xpose.msra.mxu1 %v745_v25 }
 0x1c5   : > { %853 = vrot.lane.b32.xlu1 %v1625_v26, %s2063_s29  ;;  %1728 = vmatprep.subr.bf16.mxu1 %v2059_v0 }
 0x1c7   : > { %965 = vrot.lane.b32.xlu0 %v739_v22, %s2064_s8 }
 0x1c9   : > { %967 = vrot.lane.b32.xlu1 %v1625_v26, %s2064_s8 }
 0x1cb   : > { %1719 = vmatmul.mubr.msk.bf16.vlgmr.msra.gmra.mrb[4].mxu1 %vm740_vm3, %v739_v22  ;;  %1076 = vrot.lane.b32.xlu0 %v739_v22, %s2065_s9 }
 0x1cc   : > { %1730 = vmatprep.mubr.msk.bf16.mxu1 %vm2060_vm0, %v2059_v0 }
 0x1cd   : > { %1078 = vrot.lane.b32.xlu1 %v1625_v26, %s2065_s9 }
 0x235   : > { %v849_v34 = vpop.permute.xlu0 %848 }
 0x237   : > { %v854_v31 = vpop.permute.xlu1 %853 }
 0x238   : > { %v859_v32 = vsel %vm740_vm3, %v854_v31, 0 }
 0x239   : > { %1729 = vmatpush3.bf16.xpose.msra.mxu1 %v859_v32  ;;  %v966_v37 = vpop.permute.xlu0 %965 }
 0x23a   : > { %1740 = vmatprep.subr.bf16.mxu1 %v2059_v0 }
 0x23b   : > { %v968_v33 = vpop.permute.xlu1 %967 }
 0x23c   : > { %v973_v35 = vsel %vm740_vm3, %v968_v33, 0 }
 0x23d   : > { %v1077_v39 = vpop.permute.xlu0 %1076 }
 0x23f   : > { %v1079_v36 = vpop.permute.xlu1 %1078 }
 0x240   : > { %1731 = vmatmul.mubr.msk.bf16.vlgmr.msra.gmra.mrb[8].mxu1 %vm740_vm3, %v849_v34  ;;  %v1084_v38 = vsel %vm740_vm3, %v1079_v36, 0 }
 0x241   : > { %1741 = vmatpush3.bf16.xpose.msra.mxu1 %v973_v35  ;;  %1742 = vmatprep.mubr.msk.bf16.mxu1 %vm2060_vm0, %v2059_v0 }
 0x242   : > { %1752 = vmatprep.subr.bf16.mxu1 %v2059_v0 }
 0x248   : > { %1743 = vmatmul.mubr.msk.bf16.vlgmr.msra.gmra.mrb[12].mxu1 %vm740_vm3, %v966_v37 }
 0x249   : > { %1753 = vmatpush3.bf16.xpose.msra.mxu1 %v1084_v38  ;;  %1754 = vmatprep.mubr.msk.bf16.mxu1 %vm2060_vm0, %v2059_v0 }
 0x24a   : > { %1764 = vmatprep.subr.bf16.mxu1 %v2059_v0 }
 0x250   : > { %1755 = vmatmul.mubr.msk.bf16.vlgmr.msra.gmra.mrb[16].mxu1 %vm740_vm3, %v1077_v39 }
 0x251   : > { %1768 = vmatprep.mubr.msk.bf16.mxu1 %vm2060_vm0, %v2059_v0 }
 0x29e   : > { %v781_v40 = vpop.f32.mrb[4].mxu1 }
 0x29f   : > { %v787_v41 = vmul.f32 0.35355338, %v781_v40  ;;  %v1720_v42 = vpop.f32.mrb[5].mxu1 }
 0x2a0   : > { %v784_v43 = vpop.f32.mrb[6].mxu1 }
 0x2a1   : > { %v1721_v44 = vpop.f32.mrb[7].mxu1  ;;  %v788_v45 = vsel %vm740_vm3, %v787_v41, -inf }
 0x2a2   : > { %789 = vmax.xlane.f32.xlu1 %v788_v45 }
 0x313   : > { %v895_v46 = vpop.f32.mrb[8].mxu1 }
 0x314   : > { %v901_v47 = vmul.f32 0.35355338, %v895_v46  ;;  %v1732_v48 = vpop.f32.mrb[9].mxu1 }
 0x315   : > { %v898_v49 = vpop.f32.mrb[10].mxu1 }
 0x316   : > { %v1733_v50 = vpop.f32.mrb[11].mxu1  ;;  %v902_v51 = vsel %vm740_vm3, %v901_v47, -inf }
 0x317   : > { %903 = vmax.xlane.f32.xlu0 %v902_v51 }
 0x31b   : > { %v1009_v52 = vpop.f32.mrb[12].mxu1 }
 0x31c   : > { %v1015_v53 = vmul.f32 0.35355338, %v1009_v52  ;;  %v1744_v54 = vpop.f32.mrb[13].mxu1 }
 0x31d   : > { %v1012_v55 = vpop.f32.mrb[14].mxu1  ;;  %v1881_v54 = vld [vmem:[%s2529_s4] sm:$0xff]  }
 0x31e   : > { %v1745_v56 = vpop.f32.mrb[15].mxu1  ;;  %v1016_v57 = vsel %vm740_vm3, %v1015_v53, -inf  ;;  %1765 = vmatpush3.bf16.msra.mxu1 %v1881_v54 }
 0x31f   : > { %1017 = vmax.xlane.f32.xlu0 %v1016_v57  ;;  %1766 = vmatprep.subr.bf16.mxu1 %v2059_v0 }
 0x323   : > { %v1120_v58 = vpop.f32.mrb[16].mxu1 }
 0x324   : > { %v1126_v59 = vmul.f32 0.35355338, %v1120_v58  ;;  %v1756_v60 = vpop.f32.mrb[17].mxu1 }
 0x325   : > { %v1123_v61 = vpop.f32.mrb[18].mxu1 }
 0x326   : > { %v1757_v62 = vpop.f32.mrb[19].mxu1  ;;  %v1127_v63 = vsel %vm740_vm3, %v1126_v59, -inf }
 0x327   : > { %1128 = vmax.xlane.f32.xlu1 %v1127_v63 }
 0x32f   : > { %v790_v1 = vpop.xlane.xlu1 %789 }
 0x330   : > { %v791_v2 = vsub.f32 %v787_v41, %v790_v1 }
 0x332   : > { %v792_v4 = vmul.f32 1.442695, %v791_v2 }
 0x334   : > { %1889 = vpow2.f32 %v792_v4 }
 0x335   : > { %625 = vrot.lane.b32.xlu0 %v2321_v3, %s2062_s27  ;;  %s2067_s27 = smov 16  }
 0x33e   : > { %v1890_v5 = vpop.eup %1889 }
 0x33f   : > { %v794_v6 = vsel %vm740_vm3, %v1890_v5, 0.0 }
 0x340   : > { %795 = vadd.xlane.f32.xlu1 %v794_v6 }
 0x3a4   : > { %v904_v7 = vpop.xlane.xlu0 %903 }
 0x3a5   : > { %v905_v8 = vsub.f32 %v901_v47, %v904_v7 }
 0x3a7   : > { %v906_v10 = vmul.f32 1.442695, %v905_v8 }
 0x3a9   : > { %1891 = vpow2.f32 %v906_v10 }
 0x3ac   : > { %v1018_v11 = vpop.xlane.xlu0 %1017 }
 0x3ad   : > { %v1019_v12 = vsub.f32 %v1015_v53, %v1018_v11 }
 0x3af   : > { %v1020_v13 = vmul.f32 1.442695, %v1019_v12 }
 0x3b0   : > { %v626_v14 = vpop.permute.xlu0 %625 }
 0x3b1   : > { %1893 = vpow2.f32 %v1020_v13  ;;  %v663_v15 = vadd.f32 %v2363_v27, %v626_v14  ;;  %v1633_v14 = vld [vmem:[%s2530_s5] ss:$0 sm:$0xff] }
 0x3b3   : > { %v1892_v16 = vpop.eup %1891  ;;  %v671_v17 = vpack.c.bf16 %v663_v15, %v663_v15 }
 0x3b4   : > { %v1129_v18 = vpop.xlane.xlu1 %1128  ;;  %v908_v3 = vsel %vm740_vm3, %v1892_v16, 0.0 }
 0x3b5   : > { %672 = vst.msk [vmem:[#allocation3] sm:$0xf] %vm669_vm2, %v671_v17  ;;  %v1130_v19 = vsub.f32 %v1126_v59, %v1129_v18  ;;  %909 = vadd.xlane.f32.xlu1 %v908_v3  ;;  %v1882_v59 = vld [vmem:[%s2529_s4 + $0x8] sm:$0xff]  }
 0x3b6   : > { %1767 = vmatpush3.bf16.msra.mxu1 %v1882_v59 }
 0x3b7   : > { %v1131_v20 = vmul.f32 1.442695, %v1130_v19  ;;  %1780 = vmatprep.subr.bf16.mxu1 %v2059_v0 }
 0x3b9   : > { %1895 = vpow2.f32 %v1131_v20 }
 0x3bb   : > { %v1894_v21 = vpop.eup %1893 }
 0x3bc   : > { %v1022_v22 = vsel %vm740_vm3, %v1894_v21, 0.0  ;;  %v738_v23 = vld [vmem:[#allocation3] sm:$0xf] }
 0x3bd   : > { %1023 = vadd.xlane.f32.xlu1 %v1022_v22  ;;  %v805_v24 = vsel %vm803_vm4, %v738_v23, 0  ;;  %v1627_v25 = vcombine.low %v738_v23, %v738_v23 }
 0x3be   : > { %1723 = vmatpush3.bf16.msra.mxu0 %v805_v24 }
 0x3bf   : > { %1028 = vrot.lane.b32.xlu0 %v1627_v25, %s2064_s8  ;;  %1734 = vmatprep.subr.bf16.mxu0 %v2059_v0  ;;  %s2574_s8 = sld [smem:[#allocation19_spill]] }
 0x3c3   : > { %v1896_v26 = vpop.eup %1895  ;;  %1139 = vrot.lane.b32.xlu0 %v1627_v25, %s2065_s9  ;;  %s1614_s9 = sshll.u32 %s2294_s19, 3 }
 0x3c4   : > { %v1133_v27 = vsel %vm740_vm3, %v1896_v26, 0.0  ;;  %s532_s26 = scalar_lea.vmem [#allocation9], %s1614_s9 }
 0x3c5   : > { %1134 = vadd.xlane.f32.xlu1 %v1133_v27  ;;  %v1884_v27 = vld [vmem:[#allocation7 + $0x8] sm:$0xff]   ;;  %s1500_s12 = sshll.u32 %s532_s26, 4  ;;  %s2477_s12 = int_to_ptr.vmem [resolvable:$true] %s1500_s12 }
 0x3c6   : > { %s1967_s23 = scalar_lea.vmem %s2477_s12, 128 }
 0x3c7   : > { %p1968_p6 = scmp.ne.s32.totalorder %s2477_s12, %s1967_s23 }
 0x3c9   : > { %p1969_p8 = pnand %p1968_p6, %p2241_p10 }
 0x3cb   : > { %p1970_p12 = pneg %p1969_p8 }
 0x3cd   : > { %v796_v28 = vpop.xlane.xlu1 %795 }
 0x3ce   : > { %1897 = vrcp.f32 %v796_v28  ;;  %v1886_v28 = vld [vmem:[%s2535_s10 + $0x8] sm:$0xff]  }
 0x3d6   : > { %917 = vrot.lane.b32.xlu1 %v1627_v25, %s2063_s29  ;;  %s2577_s29 = sld [smem:[#allocation22_spill]] }
 0x3d8   : > { %v1898_v29 = vpop.eup %1897 }
 0x3d9   : > { %v798_v30 = vmul.f32 %v1898_v29, %v1890_v5 }
 0x3db   : > { %v799_v31 = vpack.c.bf16 %v798_v30, %v798_v30 }
 0x3dd   : > { %1725 = vmatmul.mubr.msk.bf16.vlgmr.msra.gmra.mrb[8].mxu0 %vm740_vm3, %v799_v31 }
 0x3de   : > { %1736 = vmatprep.mubr.msk.bf16.mxu0 %vm2060_vm0, %v2059_v0 }
 0x431   : > { %v1029_v39 = vpop.permute.xlu0 %1028 }
 0x432   : > { %v1034_v42 = vsel %vm803_vm4, %v1029_v39, 0  ;;  %v1887_v39 = vld [vmem:[%s2535_s10 + $0x10] sm:$0xff]  }
 0x435   : > { %v1140_v44 = vpop.permute.xlu0 %1139 }
 0x436   : > { %v1145_v47 = vsel %vm803_vm4, %v1140_v44, 0 }
 0x442   : > { %v910_v32 = vpop.xlane.xlu1 %909 }
 0x443   : > { %1899 = vrcp.f32 %v910_v32 }
 0x44a   : > { %v1024_v33 = vpop.xlane.xlu1 %1023 }
 0x44b   : > { %1901 = vrcp.f32 %v1024_v33  ;;  %v1637_v33 = vld [vmem:[%s2531_s6] ss:$0 sm:$0xff] }
 0x44d   : > { %v1900_v34 = vpop.eup %1899 }
 0x44e   : > { %v912_v36 = vmul.f32 %v1900_v34, %v1892_v16 }
 0x450   : > { %v913_v40 = vpack.c.bf16 %v912_v36, %v912_v36 }
 0x452   : > { %v1135_v35 = vpop.xlane.xlu1 %1134 }
 0x453   : > { %1903 = vrcp.f32 %v1135_v35  ;;  %v1638_v35 = vld [vmem:[%s2532_s7] ss:$0 sm:$0xff] }
 0x455   : > { %v1902_v41 = vpop.eup %1901 }
 0x456   : > { %v918_v37 = vpop.permute.xlu1 %917  ;;  %v1026_v43 = vmul.f32 %v1902_v41, %v1894_v21  ;;  %v1639_v41 = vld [vmem:[%s2573_s14] ss:$0 sm:$0xff] }
 0x457   : > { %v923_v38 = vsel %vm803_vm4, %v918_v37, 0 }
 0x458   : > { %1735 = vmatpush3.bf16.msra.mxu0 %v923_v38  ;;  %v1027_v45 = vpack.c.bf16 %v1026_v43, %v1026_v43 }
 0x459   : > { %1746 = vmatprep.subr.bf16.mxu0 %v2059_v0 }
 0x45b   : > { %1737 = vmatmul.mubr.msk.bf16.vlgmr.msra.gmra.mrb[12].mxu0 %vm740_vm3, %v913_v40  ;;  %v1888_v40 = vld [vmem:[%s2535_s10 + $0x18] sm:$0xff]  }
 0x45c   : > { %1747 = vmatpush3.bf16.msra.mxu0 %v1034_v42  ;;  %1748 = vmatprep.mubr.msk.bf16.mxu0 %vm2060_vm0, %v2059_v0 }
 0x45d   : > { %1758 = vmatprep.subr.bf16.mxu0 %v2059_v0  ;;  %v1904_v46 = vpop.eup %1903 }
 0x45e   : > { %v1137_v48 = vmul.f32 %v1904_v46, %v1896_v26  ;;  %v1883_v26 = vld [vmem:[#allocation7] sm:$0xff]  }
 0x460   : > { %v1138_v49 = vpack.c.bf16 %v1137_v48, %v1137_v48 }
 0x463   : > { %1749 = vmatmul.mubr.msk.bf16.vlgmr.msra.gmra.mrb[16].mxu0 %vm740_vm3, %v1027_v45 }
 0x464   : > { %1759 = vmatpush3.bf16.msra.mxu0 %v1145_v47  ;;  %1760 = vmatprep.mubr.msk.bf16.mxu0 %vm2060_vm0, %v2059_v0 }
 0x465   : > { %1772 = vmatprep.subr.bf16.mxu0 %v2059_v0 }
 0x46b   : > { %1761 = vmatmul.mubr.msk.bf16.vlgmr.msra.gmra.mrb[20].mxu0 %vm740_vm3, %v1138_v49 }
 0x46c   : > { %1776 = vmatprep.mubr.msk.bf16.mxu0 %vm2060_vm0, %v2059_v0  ;;  %1773 = vmatpush3.bf16.msra.mxu0 %v1883_v26 }
 0x46d   : > { %1774 = vmatprep.subr.bf16.mxu0 %v2059_v0 }
 0x470   : > { %1775 = vmatpush3.bf16.msra.mxu0 %v1884_v27 }
 0x4b0   : > { %v841_v50 = vpop.f32.mrb[8].mxu0 }
 0x4b1   : > { %v1726_v51 = vpop.f32.mrb[9].mxu0 }
 0x4b2   : > { %v844_v52 = vpop.f32.mrb[10].mxu0 }
 0x4b3   : > { %v1727_v53 = vpop.f32.mrb[11].mxu0 }
 0x52e   : > { %v959_v55 = vpop.f32.mrb[12].mxu0 }
 0x52f   : > { %1188 = vrot.lane.b32.xlu0 %v959_v55, %s2066_s25  ;;  %v1738_v56 = vpop.f32.mrb[13].mxu0  ;;  %s2575_s25 = sld [smem:[#allocation20_spill]] }
 0x530   : > { %v962_v57 = vpop.f32.mrb[14].mxu0 }
 0x531   : > { %v1739_v58 = vpop.f32.mrb[15].mxu0 }
 0x536   : > { %v1070_v60 = vpop.f32.mrb[16].mxu0 }
 0x537   : > { %1192 = vrot.lane.b32.xlu0 %v1070_v60, %s2067_s27  ;;  %v1750_v61 = vpop.f32.mrb[17].mxu0  ;;  %s2576_s27 = sld [smem:[#allocation21_spill]] }
 0x538   : > { %v1073_v62 = vpop.f32.mrb[18].mxu0 }
 0x539   : > { %v1751_v63 = vpop.f32.mrb[19].mxu0 }
 0x53e   : > { %v1181_v1 = vpop.f32.mrb[20].mxu0 }
 0x53f   : > { %1196 = vrot.lane.b32.xlu1 %v1181_v1, %s2068_s22  ;;  %v1762_v2 = vpop.f32.mrb[21].mxu0  ;;  %s1652_s22 = sshll.u32 %s2045_s16, 7  ;;  %s2069_s16 = smov [#allocation9]  }
 0x540   : > { %v1184_v4 = vpop.f32.mrb[22].mxu0  ;;  %v1649_v2 = vld [vmem:[%s2575_s25] ss:$0 sm:$0xff]  ;;  %s2475_s0 = scalar_lea.hbm %s2577_s29, %s1652_s22  ;;  %s1971_s9 = sshll.u32 %s2069_s16, 4  ;;  %s1972_s9 = int_to_ptr.vmem [resolvable:$false] %s1971_s9 }
 0x541   : > { %v1763_v5 = vpop.f32.mrb[23].mxu0  ;;  %s1973_s25 = scalar_lea.vmem %s1972_s9, 256  ;;  %p1974_p11 = scmp.lt.s32.totalorder %s2477_s12, %s1972_s9 }
 0x542   : > { %v1650_v5 = vld [vmem:[%s2576_s27] ss:$0 sm:$0xff]  ;;  %p1975_p0 = scmp.lt.s32.totalorder %s1973_s25, %s1967_s23 }
 0x544   : > { %p1976_p5 = por %p1975_p0, %p1974_p11 }
 0x546   : > { %p1977_p9 = pnand %p1976_p5, %p1970_p12 }
 0x5a1   : > { %v1189_v6 = vpop.permute.xlu0 %1188 }
 0x5a2   : > { %v1199_v8 = vsel %vm740_vm3, %v841_v50, %v1189_v6 }
 0x5a9   : > { %v1193_v7 = vpop.permute.xlu0 %1192 }
 0x5aa   : > { %v1201_v10 = vsel %vm1200_vm5, %v1199_v8, %v1193_v7 }
 0x5b1   : > { %v1197_v11 = vpop.permute.xlu1 %1196 }
 0x5b2   : > { %v1203_v12 = vsel %vm1202_vm6, %v1201_v10, %v1197_v11 }
 0x5b3   : > { %v1204_v13 = vpack.c.bf16 %v1203_v12, %v1203_v12 }
 0x5b5   : > { %1769 = vmatmul.mubr.msk.bf16.vlgmr.msra.gmra.mrb[20].mxu1 %vm575_vm1, %v1204_v13 }
 0x5b6   : > { %1788 = vmatprep.mubr.msk.bf16.mxu1 %vm2060_vm0, %v2059_v0 }
 0x688   : > { %v1265_v15 = vpop.f32.mrb[20].mxu1 }
 0x689   : > { %v1266_v16 = vadd.f32 %v1633_v14, %v1265_v15  ;;  %v1770_v17 = vpop.f32.mrb[21].mxu1 }
 0x68a   : > { %v1268_v18 = vpop.f32.mrb[22].mxu1 }
 0x68b   : > { %v1771_v3 = vpop.f32.mrb[23].mxu1  ;;  %v1271_v19 = vadd.f32 %v1266_v16, %v2336_v9  ;;  %v1885_v9 = vld [vmem:[%s2535_s10] sm:$0xff]  }
 0x68c   : > { %1781 = vmatpush3.bf16.msra.mxu1 %v1885_v9 }
 0x68d   : > { %v1272_v20 = vsel %vm575_vm1, %v1271_v19, 0.0  ;;  %1782 = vmatprep.subr.bf16.mxu1 %v2059_v0 }
 0x68e   : > { %1273 = vadd.xlane.f32.xlu0 %v1272_v20 }
 0x690   : > { %1783 = vmatpush3.bf16.msra.mxu1 %v1886_v28 }
 0x691   : > { %1784 = vmatprep.subr.bf16.mxu1 %v2059_v0 }
 0x694   : > { %1785 = vmatpush3.bf16.msra.mxu1 %v1887_v39 }
 0x695   : > { %1786 = vmatprep.subr.bf16.mxu1 %v2059_v0  ;;  %v1643_v0 = vld [vmem:[%s2574_s8] ss:$0 sm:$0xff]  ;;  %s2578_s8 = smov %s2577_s29 }
 0x698   : > { %1787 = vmatpush3.bf16.msra.mxu1 %v1888_v40 }
 0x71b   : > { %v1274_v21 = vpop.xlane.xlu0 %1273 }
 0x71c   : > { %v1276_v22 = vmul.f32 0.03125, %v1274_v21 }
 0x71e   : > { %v1277_v23 = vsub.f32 %v1271_v19, %v1276_v22 }
 0x720   : > { %v1278_v24 = vmul.f32 %v1277_v23, %v1277_v23 }
 0x722   : > { %v1279_v25 = vsel %vm575_vm1, %v1278_v24, 0.0 }
 0x723   : > { %1280 = vadd.xlane.f32.xlu1 %v1279_v25 }
 0x7b0   : > { %v1281_v29 = vpop.xlane.xlu1 %1280 }
 0x7b1   : > { %v1282_v30 = vmul.f32 0.03125, %v1281_v29 }
 0x7b3   : > { %v1283_v31 = vadd.f32 1e-05, %v1282_v30 }
 0x7b5   : > { %1905 = vrsqrt.f32 %v1283_v31 }
 0x7bf   : > { %v1906_v32 = vpop.eup %1905 }
 0x7c0   : > { %v1285_v34 = vmul.f32 %v1906_v32, %v1277_v23 }
 0x7c2   : > { %v1293_v36 = vmul.f32 %v1637_v33, %v1285_v34 }
 0x7c4   : > { %v1301_v37 = vadd.f32 %v1638_v35, %v1293_v36 }
 0x7c6   : > { %v1302_v38 = vpack.c.bf16 %v1301_v37, %v1301_v37 }
 0x7c8   : > { %1777 = vmatmul.mubr.msk.bf16.vlgmr.msra.gmra.mrb[24].mxu0 %vm575_vm1, %v1302_v38 }
 0x89b   : > { %v1363_v42 = vpop.f32.mrb[24].mxu0 }
 0x89c   : > { %v1364_v43 = vadd.f32 %v1639_v41, %v1363_v42  ;;  %v1778_v44 = vpop.f32.mrb[25].mxu0 }
 0x89d   : > { %v1366_v45 = vpop.f32.mrb[26].mxu0 }
 0x89e   : > { %v1369_v46 = vmax.f32 %v1364_v43, 0.0  ;;  %v1779_v47 = vpop.f32.mrb[27].mxu0 }
 0x8a0   : > { %v1370_v48 = vpack.c.bf16 %v1369_v46, %v1369_v46 }
 0x8a2   : > { %1789 = vmatmul.mubr.msk.bf16.vlgmr.msra.gmra.mrb[24].mxu1 %vm1410_vm7, %v1370_v48 }
 0x975   : > { %v1448_v49 = vpop.f32.mrb[24].mxu1 }
 0x976   : > { %v1449_v50 = vadd.f32 %v1643_v0, %v1448_v49  ;;  %v1790_v51 = vpop.f32.mrb[25].mxu1 }
 0x977   : > { %v1451_v52 = vpop.f32.mrb[26].mxu1 }
 0x978   : > { %v1791_v53 = vpop.f32.mrb[27].mxu1  ;;  %v1454_v54 = vadd.f32 %v1449_v50, %v1301_v37 }
 0x97a   : > { %v1455_v55 = vsel %vm575_vm1, %v1454_v54, 0.0 }
 0x97b   : > { %1456 = vadd.xlane.f32.xlu0 %v1455_v55 }
 0xa08   : > { %v1457_v56 = vpop.xlane.xlu0 %1456 }
 0xa09   : > { %v1458_v57 = vmul.f32 0.03125, %v1457_v56 }
 0xa0b   : > { %v1459_v58 = vsub.f32 %v1454_v54, %v1458_v57 }
 0xa0d   : > { %v1460_v59 = vmul.f32 %v1459_v58, %v1459_v58 }
 0xa0f   : > { %v1461_v60 = vsel %vm575_vm1, %v1460_v59, 0.0 }
 0xa10   : > { %1462 = vadd.xlane.f32.xlu0 %v1461_v60 }
 0xa9d   : > { %v1463_v61 = vpop.xlane.xlu0 %1462 }
 0xa9e   : > { %v1464_v62 = vmul.f32 0.03125, %v1463_v61 }
 0xaa0   : > { %v1465_v63 = vadd.f32 1e-05, %v1464_v62 }
 0xaa2   : > { %1907 = vrsqrt.f32 %v1465_v63 }
 0xaac   : > { %v1908_v1 = vpop.eup %1907 }
 0xaad   : > { %v1467_v4 = vmul.f32 %v1908_v1, %v1459_v58 }
 0xaaf   : > { %v1475_v6 = vmul.f32 %v1649_v2, %v1467_v4 }
 0xab1   : > { %v1483_v7 = vadd.f32 %v1650_v5, %v1475_v6 }
 0xab3   : > { %1484 = vst.msk [vmem:[%s532_s26] sm:$0xff] %vm575_vm1, %v1483_v7 }
 0xab4   : > { %1980 = shalt.err (!%p1977_p9)
}
 0xab5   : > { %s1981_s19 = scalar_lea.hbm %s2475_s0, 128  ;;  %s1985_s27 = scalar_lea.hbm %s2578_s8, 256 }
 0xab6   : > { %p1982_p1 = scmp.ne.s32.totalorder %s2475_s0, %s1981_s19  ;;  %p1986_p3 = scmp.lt.u32.totalorder %s2475_s0, %s2578_s8 }
 0xab7   : > { %p1987_p4 = scmp.lt.u32.totalorder %s1985_s27, %s1981_s19  ;;  %p1989_p6 = scmp.lt.u32.totalorder %s1981_s19, %s2475_s0 }
 0xab8   : > { %p1983_p2 = pnand %p1982_p1, %p2241_p10 }
 0xab9   : > { %p1988_p13 = por %p1987_p4, %p1986_p3 }
 0xaba   : > { %p1984_p7 = pneg %p1983_p2 }
 0xabb   : > { %p1990_p8 = por %p1989_p6, %p1988_p13 }
 0xabd   : > { %p1991_p12 = pnand %p1990_p8, %p1984_p7 }
 0xabf   : > { %1994 = shalt.err (!%p1991_p12)
}
 0xac0   : > { %1798 = dma.vmem_to_hbm [thread:$0]  (%p2241_p10), %s2477_s12, 128, %s2475_s0, %s1486_s21  }
 0xac1 PF: > { %s2579_s14 = sld [smem:[#allocation13_spill]]  ;;  %s2580_s24 = sld [smem:[#allocation14_spill]] }
 0xac2   : > { %p2582_p0 = scmp.ge.s32.totalorder %s2053_s18, 2 }
 0xac7   : > { %s1512_s29 = sand.u32 1, %s2579_s14   ;;  %p2581_p11 = scmp.ne.s32.totalorder %s2580_s24, 0 }
 0xac8   : > { %s1513_s23 = scalar_lea.sflag [#allocation6], %s1512_s29 }
 0xac9   : > { %p1809_p5 = pnand %p2582_p0, %p2581_p11 }
 0xacb   : > { %2028 = dma.done.wait (!%p1809_p5), %s1513_s23, 128  }
 0xacc   : > { %2030 = vsyncadd (!%p1809_p5), %s1513_s23, 4294967168  ;;  %s31_s18 = sadd.s32 1, %s2053_s18   ;;  %s2583_s20 = sld [smem:[#allocation15_spill]] }
 0xacd   : > { %p28_p9 = scmp.ge.s32.totalorder %s31_s18, 4   ;;  %s2584_s29 = smov %s2037_s30 }
 0xace   : > { %s2585_s30 = smov %s2041_s15  ;;  %s2586_s15 = smov %s2250_s13 }
 0xacf   : > { %s2587_s16 = smov %s2049_s17  ;;  %30 = sbr.rel (!%p28_p9) target bundleno = 15 (0xf), region = 132 }
 0xad2   : > { %s2588_s17 = smov %s2583_s20 }
 0xad6   :  { %1518 = vsyncpa [#allocation5], 1 }
 0xad7   :  { %1520 = vsyncpa [#allocation5 + $0x1], 1 }
 0xad8   :  { %1521 = vsyncpa [#allocation8], 1 }
 0xad9   :  { %1522 = vsyncpa [#allocation6], 1 }
 0xada   :  { %1524 = vsyncpa [#allocation6 + $0x1], 1 }

</bundles_post_ra>
